<compile_context>
chip_gen: v7x
topology: tpu7x:2x2x1
jax: 0.10.0
libtpu: 0.0.40
codegen_flags: <defaults>
</compile_context>

<pallas_src>
import math

import jax
import jax.numpy as jnp
from jax import lax
from jax.experimental import pallas as pl
from jax.experimental.pallas import tpu as pltpu


def _make_embedding_gather_kernel(d_model: int, token_block: int, n_live: int):
    """Builds the per-block gather kernel.

    n_live = number of row-copy DMAs kept in flight (>= 4-8 recommended on v5e
    so tiny d_model*4-byte copies hide descriptor latency).
    """
    # Python float -> folded into the jaxpr as a literal (no captured consts).
    scale = float(math.sqrt(d_model))

    def kernel(ids_ref, table_hbm, out_ref, slab, sems):
        # ids_ref   : SMEM (n_pad,)                 int32  -- all token ids
        # table_hbm : HBM  (n_token, d_model)       float  -- stays in HBM
        # out_ref   : VMEM (token_block, d_model)   float  -- output slab
        # slab      : VMEM (token_block, d_model)   float  -- gather buffer
        # sems      : DMA semaphores (n_live,)
        base = pl.program_id(0) * token_block

        def issue(t):
            slot = t % n_live
            row = ids_ref[base + t]                       # scalar SMEM read
            pltpu.make_async_copy(
                table_hbm.at[pl.ds(row, 1), :],           # one table row (HBM)
                slab.at[pl.ds(t, 1), :],                  # row t of the slab
                sems.at[slot],
            ).start()

        def wait_for(t):
            slot = t % n_live
            # Only the copy size matters for the wait, so src row 0 is fine.
            pltpu.make_async_copy(
                table_hbm.at[pl.ds(0, 1), :],
                slab.at[pl.ds(t, 1), :],
                sems.at[slot],
            ).wait()

        # Prime the pipeline: put n_live row copies in flight.
        @pl.loop(0, n_live)
        def _prime(t):
            issue(t)

        # Steady state: retire copy t, refill its semaphore slot with copy
        # t + n_live.  At most n_live DMAs are outstanding at any time.
        @pl.loop(0, token_block)
        def _steady(t):
            wait_for(t)

            @pl.when(t + n_live < token_block)
            def _():
                issue(t + n_live)

        # Scale the whole slab once; single lane-dense full-width store.
        # TODO(synk): emit bf16 here (out_shape dtype) if downstream consumes
        # bf16 activations — halves HBM writeback bytes on all generations.
        out_ref[...] = (slab[...] * scale).astype(out_ref.dtype)

    return kernel


def embeddings_forward(x, table, *, token_block: int = 256, dmas_in_flight: int = 8):
    """x: (B, S) integer token ids; table: (n_token, d_model) float.
    Returns (B, S, d_model) == Embedding(x) * sqrt(d_model)."""
    B, S = x.shape
    n_token, d_model = table.shape
    n_flat = B * S

    # Pad flattened ids up to a multiple of token_block (no divisibility assert).
    n_blocks = pl.cdiv(n_flat, token_block)
    n_pad = n_blocks * token_block

    ids = x.reshape(n_flat).astype(jnp.int32)
    # Clamp so every DMA source row is in range (PyTorch would error on OOB
    # ids anyway).  Padded tail ids are 0 -> they gather (valid) row 0, which
    # is harmless because the wrapper slices the padding off below.
    ids = jnp.clip(ids, 0, n_token - 1)
    if n_pad != n_flat:
        ids = jnp.pad(ids, (0, n_pad - n_flat))

    n_live = min(dmas_in_flight, token_block)
    kernel = _make_embedding_gather_kernel(d_model, token_block, n_live)

    grid_spec = pltpu.PrefetchScalarGridSpec(
        # ids land in SMEM before the grid runs (n_pad * 4 bytes total).
        num_scalar_prefetch=1,
        grid=(n_blocks,),
        in_specs=[
            # Table stays in HBM; rows are gathered by manual DMA, so VMEM use
            # (and hence the v7x 64 MiB budget) is independent of vocab size.
            pl.BlockSpec(memory_space=pl.ANY),
        ],
        out_specs=pl.BlockSpec((token_block, d_model), lambda i, ids: (i, 0)),
        scratch_shapes=[
            pltpu.VMEM((token_block, d_model), table.dtype),   # gather slab
            pltpu.SemaphoreType.DMA((n_live,)),                # in-flight DMAs
        ],
    )

    out_flat = pl.pallas_call(
        kernel,
        out_shape=jax.ShapeDtypeStruct((n_pad, d_model), table.dtype),
        grid_spec=grid_spec,
        compiler_params=pltpu.CompilerParams(
            # Token blocks are fully independent -> shardable across v7x's 2 TCs.
            dimension_semantics=("parallel",),
        ),
    )(ids, table)

    return out_flat[:n_flat].reshape(B, S, d_model)


if __name__ == "__main__":
    # Small, deterministic setup consistent with the module.
    n_token, d_model = 64, 128
    B, S = 2, 8

    key = jax.random.PRNGKey(0)
    k_tab, k_ids = jax.random.split(key)

    # nn.Embedding default init is N(0, 1).
    table = jax.random.normal(k_tab, (n_token, d_model), dtype=jnp.float32)
    x = jax.random.randint(k_ids, (B, S), 0, n_token, dtype=jnp.int32)

    out = jax.block_until_ready(embeddings_forward(x, table))

    # Pure-JAX reference check.
    ref = table[x] * jnp.float32(math.sqrt(d_model))
    assert out.shape == (B, S, d_model)
    # A DMA row gather + a single f32 scale should match the reference
    # essentially bit-for-bit; keep the tolerance tight.
    assert jnp.allclose(out, ref, atol=1e-6, rtol=1e-6), float(
        jnp.max(jnp.abs(out - ref)))

    print("KERNEL_OK")
</pallas_src>

<mosaic_0001>
module attributes {stable_mosaic.version = 11 : i64} {
  func.func @kernel(%arg0: i32, %arg1: memref<256xi32, #tpu.memory_space<smem>>, %arg2: memref<64x128xf32, #tpu.memory_space<any>>, %arg3: memref<256x128xf32, #tpu.memory_space<vmem>>, %arg4: memref<256x128xf32, #tpu.memory_space<vmem>>, %arg5: memref<8x!tpu.dma_semaphore, #tpu.memory_space<semaphore_mem>>) attributes {dimension_semantics = [#tpu.dimension_semantics<parallel>], iteration_bounds = array<i64: 1>, scalar_prefetch = 1 : i64, scratch_operands = 2 : i64, tpu.core_type = #tpu.core_type<tc>, window_params = [{}, {transform_indices = @transform_1, window_bounds = array<i64: 256, 128>}]} {
    %c256_i32 = arith.constant 256 : i32
    %0 = arith.muli %arg0, %c256_i32 : i32
    %c0_i32 = arith.constant 0 : i32
    %c8_i32 = arith.constant 8 : i32
    %1 = arith.addi %c0_i32, %c8_i32 : i32
    %c1_i32 = arith.constant 1 : i32
    scf.for %arg6 = %c0_i32 to %1 step %c1_i32  : i32 {
      %c1_i32_8 = arith.constant 1 : i32
      %7 = arith.muli %arg6, %c1_i32_8 : i32
      %c0_i32_9 = arith.constant 0 : i32
      %8 = arith.addi %c0_i32_9, %7 : i32
      %c8_i32_10 = arith.constant 8 : i32
      %c0_i32_11 = arith.constant 0 : i32
      %9 = arith.cmpi eq, %c8_i32_10, %c0_i32_11 : i32
      %c1_i32_12 = arith.constant 1 : i32
      %10 = arith.select %9, %c1_i32_12, %c8_i32_10 : i32
      %11 = arith.remsi %8, %10 : i32
      %c0_i32_13 = arith.constant 0 : i32
      %12 = arith.cmpi ne, %11, %c0_i32_13 : i32
      %c0_i32_14 = arith.constant 0 : i32
      %13 = arith.cmpi slt, %11, %c0_i32_14 : i32
      %c0_i32_15 = arith.constant 0 : i32
      %14 = arith.cmpi slt, %10, %c0_i32_15 : i32
      %15 = arith.xori %13, %14 : i1
      %16 = arith.andi %15, %12 : i1
      %17 = arith.addi %11, %10 : i32
      %18 = arith.select %16, %17, %11 : i32
      %19 = arith.addi %0, %8 : i32
      %20 = arith.index_cast %19 : i32 to index
      %21 = memref.load %arg1[%20] : memref<256xi32, #tpu.memory_space<smem>>
      %c0_i32_16 = arith.constant 0 : i32
      %22 = tpu.memref_slice %arg2[%21, %c0_i32_16] : memref<64x128xf32, #tpu.memory_space<any>> -> memref<1x128xf32, #tpu.memory_space<any>>
      %c0_i32_17 = arith.constant 0 : i32
      %23 = tpu.memref_slice %arg4[%8, %c0_i32_17] : memref<256x128xf32, #tpu.memory_space<vmem>> -> memref<1x128xf32, #tpu.memory_space<vmem>>
      %24 = tpu.memref_slice %arg5[%18] : memref<8x!tpu.dma_semaphore, #tpu.memory_space<semaphore_mem>> -> memref<1x!tpu.dma_semaphore, #tpu.memory_space<semaphore_mem>>
      %25 = tpu.memref_squeeze %24 : memref<1x!tpu.dma_semaphore, #tpu.memory_space<semaphore_mem>> -> memref<!tpu.dma_semaphore, #tpu.memory_space<semaphore_mem>>
      tpu.enqueue_dma source(%22 : memref<1x128xf32, #tpu.memory_space<any>>) target(%23 : memref<1x128xf32, #tpu.memory_space<vmem>>) target_semaphore(%25 : memref<!tpu.dma_semaphore, #tpu.memory_space<semaphore_mem>>)
    }
    %c8_i32_0 = arith.constant 8 : i32
    %c0_i32_1 = arith.constant 0 : i32
    %c256_i32_2 = arith.constant 256 : i32
    %2 = arith.addi %c0_i32_1, %c256_i32_2 : i32
    %c1_i32_3 = arith.constant 1 : i32
    scf.for %arg6 = %c0_i32_1 to %2 step %c1_i32_3  : i32 {
      %c1_i32_8 = arith.constant 1 : i32
      %7 = arith.muli %arg6, %c1_i32_8 : i32
      %c0_i32_9 = arith.constant 0 : i32
      %8 = arith.addi %c0_i32_9, %7 : i32
      %c8_i32_10 = arith.constant 8 : i32
      %c0_i32_11 = arith.constant 0 : i32
      %9 = arith.cmpi eq, %c8_i32_10, %c0_i32_11 : i32
      %c1_i32_12 = arith.constant 1 : i32
      %10 = arith.select %9, %c1_i32_12, %c8_i32_10 : i32
      %11 = arith.remsi %8, %10 : i32
      %c0_i32_13 = arith.constant 0 : i32
      %12 = arith.cmpi ne, %11, %c0_i32_13 : i32
      %c0_i32_14 = arith.constant 0 : i32
      %13 = arith.cmpi slt, %11, %c0_i32_14 : i32
      %c0_i32_15 = arith.constant 0 : i32
      %14 = arith.cmpi slt, %10, %c0_i32_15 : i32
      %15 = arith.xori %13, %14 : i1
      %16 = arith.andi %15, %12 : i1
      %17 = arith.addi %11, %10 : i32
      %18 = arith.select %16, %17, %11 : i32
      %c0_i32_16 = arith.constant 0 : i32
      %c0_i32_17 = arith.constant 0 : i32
      %19 = tpu.memref_slice %arg2[%c0_i32_16, %c0_i32_17] : memref<64x128xf32, #tpu.memory_space<any>> -> memref<1x128xf32, #tpu.memory_space<any>>
      %c0_i32_18 = arith.constant 0 : i32
      %20 = tpu.memref_slice %arg4[%8, %c0_i32_18] : memref<256x128xf32, #tpu.memory_space<vmem>> -> memref<1x128xf32, #tpu.memory_space<vmem>>
      %21 = tpu.memref_slice %arg5[%18] : memref<8x!tpu.dma_semaphore, #tpu.memory_space<semaphore_mem>> -> memref<1x!tpu.dma_semaphore, #tpu.memory_space<semaphore_mem>>
      %22 = tpu.memref_squeeze %21 : memref<1x!tpu.dma_semaphore, #tpu.memory_space<semaphore_mem>> -> memref<!tpu.dma_semaphore, #tpu.memory_space<semaphore_mem>>
      tpu.wait_dma2 semaphore(%22 : memref<!tpu.dma_semaphore, #tpu.memory_space<semaphore_mem>>) src(%19 : memref<1x128xf32, #tpu.memory_space<any>>) dst(%20 : memref<1x128xf32, #tpu.memory_space<vmem>>)
      %c8_i32_19 = arith.constant 8 : i32
      %23 = arith.addi %8, %c8_i32_19 : i32
      %c256_i32_20 = arith.constant 256 : i32
      %24 = arith.cmpi slt, %23, %c256_i32_20 : i32
      %25 = arith.extui %24 : i1 to i32
      %c0_i32_21 = arith.constant 0 : i32
      %26 = arith.cmpi ne, %25, %c0_i32_21 : i32
      scf.if %26 {
        %c8_i32_22 = arith.constant 8 : i32
        %27 = arith.addi %8, %c8_i32_22 : i32
        %c8_i32_23 = arith.constant 8 : i32
        %c0_i32_24 = arith.constant 0 : i32
        %28 = arith.cmpi eq, %c8_i32_23, %c0_i32_24 : i32
        %c1_i32_25 = arith.constant 1 : i32
        %29 = arith.select %28, %c1_i32_25, %c8_i32_23 : i32
        %30 = arith.remsi %27, %29 : i32
        %c0_i32_26 = arith.constant 0 : i32
        %31 = arith.cmpi ne, %30, %c0_i32_26 : i32
        %c0_i32_27 = arith.constant 0 : i32
        %32 = arith.cmpi slt, %30, %c0_i32_27 : i32
        %c0_i32_28 = arith.constant 0 : i32
        %33 = arith.cmpi slt, %29, %c0_i32_28 : i32
        %34 = arith.xori %32, %33 : i1
        %35 = arith.andi %34, %31 : i1
        %36 = arith.addi %30, %29 : i32
        %37 = arith.select %35, %36, %30 : i32
        %38 = arith.addi %0, %27 : i32
        %39 = arith.index_cast %38 : i32 to index
        %40 = memref.load %arg1[%39] : memref<256xi32, #tpu.memory_space<smem>>
        %c0_i32_29 = arith.constant 0 : i32
        %41 = tpu.memref_slice %arg2[%40, %c0_i32_29] : memref<64x128xf32, #tpu.memory_space<any>> -> memref<1x128xf32, #tpu.memory_space<any>>
        %c0_i32_30 = arith.constant 0 : i32
        %42 = tpu.memref_slice %arg4[%27, %c0_i32_30] : memref<256x128xf32, #tpu.memory_space<vmem>> -> memref<1x128xf32, #tpu.memory_space<vmem>>
        %43 = tpu.memref_slice %arg5[%37] : memref<8x!tpu.dma_semaphore, #tpu.memory_space<semaphore_mem>> -> memref<1x!tpu.dma_semaphore, #tpu.memory_space<semaphore_mem>>
        %44 = tpu.memref_squeeze %43 : memref<1x!tpu.dma_semaphore, #tpu.memory_space<semaphore_mem>> -> memref<!tpu.dma_semaphore, #tpu.memory_space<semaphore_mem>>
        tpu.enqueue_dma source(%41 : memref<1x128xf32, #tpu.memory_space<any>>) target(%42 : memref<1x128xf32, #tpu.memory_space<vmem>>) target_semaphore(%44 : memref<!tpu.dma_semaphore, #tpu.memory_space<semaphore_mem>>)
      } else {
      }
    }
    %c256_i32_4 = arith.constant 256 : i32
    %c0 = arith.constant 0 : index
    %c0_5 = arith.constant 0 : index
    %3 = vector.load %arg4[%c0, %c0_5] : memref<256x128xf32, #tpu.memory_space<vmem>>, vector<256x128xf32>
    %cst = arith.constant 11.3137083 : f32
    %4 = vector.broadcast %cst : f32 to vector<256x128xf32>
    %5 = arith.mulf %3, %4 : vector<256x128xf32>
    %c0_6 = arith.constant 0 : index
    %c0_7 = arith.constant 0 : index
    %6 = vector.load %arg3[%c0_6, %c0_7] : memref<256x128xf32, #tpu.memory_space<vmem>>, vector<256x128xf32>
    tpu.vector_store %arg3[%c0_6, %c0_7], %5 {strides = array<i32>} : memref<256x128xf32, #tpu.memory_space<vmem>>, vector<256x128xf32>,
    return
  }
  func.func @transform_1(%arg0: i32, %arg1: memref<256xi32, #tpu.memory_space<smem>>) -> (i32, i32) {
    %c0_i32 = arith.constant 0 : i32
    %c0_i32_0 = arith.constant 0 : i32
    return %arg0, %c0_i32 : i32, i32
  }
}

</mosaic_0001>

<bundles_post_ra>
// kernel: tpu_custom_call.1
= control target key start
LH: loop header
LB: loop body
LE: loop exit
PB: predicated region body
PF: predicated region fallthrough
CT: control target
= control target key end

     0   :  { %s561_s0 = inlined_call_operand.hbm [shape: s32[256], index: 0, kind: input, shape index: {}]   ;;  %s562_s1 = inlined_call_operand.hbm [shape: f32[64,128], index: 1, kind: input, shape index: {}]   ;;  %s563_s2 = inlined_call_operand.hbm [shape: f32[256,128], index: 2, kind: output, shape index: {}]  }
   0x1   :  { %s336_s11 = scalar_lea.hbm %s561_s0, 32 }
   0x2   :  { %p337_p0 = scmp.ne.s32.totalorder %s561_s0, %s336_s11  ;;  %p340_p1 = scmp.lt.u32.totalorder %s336_s11, %s561_s0 }
   0x4   :  { %p342_p2 = pnand %p340_p1, %p337_p0 }
   0x6   :  { %345 = shalt.err (!%p342_p2)  }
   0x7   :  { %s442_s16 = smov [#allocation5]  }
   0x8   :  { %8 = dma.hbm_to_smem %s561_s0, 32, %s442_s16, [#allocation4] }
   0x9   :  { %428 = dma.done.wait [#allocation4], 32 }
   0xa   :  { %429 = vsyncadd [#allocation4], 4294967264 }
   0xb   :  { %10 = sfence }
   0xc   :  { %11 = vsyncpa [#allocation7], 0  ;;  %s474_s19 = smov 0  }
   0xd LB: > { %p19_p3 = scmp.lt.s32.totalorder %s436_s19, 0  ;;  %s20_s20 = ssub.s32 0, %s436_s19  ;;  %s436_s19 = sphi %s474_s19, %s18_s19  }
   0xe   : > { %s291_s21 = smin.u32 %s436_s19, %s20_s20  ;;  %s32_s0 = sld [smem:[#allocation5 + %s436_s19]] }
   0xf   : > { %s22_s22 = sand.u32 7, %s291_s21   ;;  %s35_s24 = scalar_lea.vmem [#allocation2], %s436_s19 }
  0x10   : > { %s23_s23 = ssub.s32 0, %s22_s22  ;;  %s44_s25 = sshll.u32 %s35_s24, 4  ;;  %s45_s25 = int_to_ptr.vmem [resolvable:$true] %s44_s25 }
  0x11   : > { %s565_s23 = smov (!%p19_p3, %s23_s23), %s22_s22  ;;  %s348_s7 = scalar_lea.hbm %s562_s1, 1024 }
  0x12   : > { %p293_p4 = scmp.lt.s32.totalorder %s565_s23, 0  ;;  %s29_s26 = sadd.s32 8, %s565_s23 }
  0x14   : > { %s294_s27 = sshll.u32 %s32_s0, 4  ;;  %s567_s26 = smov (!%p293_p4, %s29_s26), %s565_s23 }
  0x15   : > { %s34_s30 = scalar_lea.hbm %s562_s1, %s294_s27  ;;  %s36_s3 = scalar_lea.sflag [#allocation3], %s567_s26 }
  0x16   : > { %s346_s4 = scalar_lea.hbm %s34_s30, 16  ;;  %p349_p6 = scmp.lt.u32.totalorder %s34_s30, %s562_s1 }
  0x17   : > { %p347_p5 = scmp.ne.s32.totalorder %s34_s30, %s346_s4  ;;  %p350_p7 = scmp.lt.u32.totalorder %s348_s7, %s346_s4 }
  0x18   : > { %p352_p9 = scmp.lt.u32.totalorder %s346_s4, %s34_s30 }
  0x19   : > { %p351_p8 = por %p350_p7, %p349_p6 }
  0x1b   : > { %p353_p10 = por %p352_p9, %p351_p8 }
  0x1d   : > { %p354_p11 = pnand %p353_p10, %p347_p5 }
  0x1f   : > { %357 = shalt.err (!%p354_p11)  }
  0x20   : > { %s358_s12 = scalar_lea.vmem %s45_s25, 16  ;;  %s443_s13 = smov [#allocation2]  }
  0x21   : > { %p359_p12 = scmp.ne.s32.totalorder %s45_s25, %s358_s12  ;;  %s360_s14 = sshll.u32 %s443_s13, 4  ;;  %s497_s14 = int_to_ptr.vmem [resolvable:$false] %s360_s14 }
  0x22   : > { %s362_s15 = scalar_lea.vmem %s497_s14, 4096  ;;  %p363_p13 = scmp.lt.s32.totalorder %s45_s25, %s497_s14 }
  0x23   : > { %p364_p0 = scmp.lt.s32.totalorder %s362_s15, %s358_s12 }
  0x25   : > { %p365_p1 = por %p364_p0, %p363_p13 }
  0x27   : > { %p366_p2 = pnand %p365_p1, %p359_p12 }
  0x29   : > { %369 = shalt.err (!%p366_p2)  }
  0x2a   : > { %47 = dma.hbm_to_vmem [thread:$0]  %s34_s30, 16, %s45_s25, %s36_s3 }
  0x2b   : > { %s18_s19 = sadd.s32 1, %s436_s19  }
  0x2c   : > { %p15_p3 = scmp.ge.s32.totalorder %s18_s19, 8  }
  0x2d   :  { %s506_s16 = smov (%p15_p3), 0  }
  0x2e   :  { %17 = sbr.rel (!%p15_p3) target bundleno = 13 (0xd), region = 60 }
  0x35 LB: > { %p54_p4 = scmp.lt.s32.totalorder %s440_s16, 0  ;;  %s55_s17 = ssub.s32 0, %s440_s16  ;;  %s440_s16 = sphi %s506_s16, %s53_s16  }
  0x36   : > { %s295_s18 = smin.u32 %s440_s16, %s55_s17 }
  0x37   : > { %s57_s20 = sand.u32 7, %s295_s18  }
  0x38   : > { %s58_s21 = ssub.s32 0, %s57_s20 }
  0x39   : > { %s569_s21 = smov (!%p54_p4, %s58_s21), %s57_s20 }
  0x3a   : > { %p297_p5 = scmp.lt.s32.totalorder %s569_s21, 0  ;;  %s64_s0 = sadd.s32 8, %s569_s21 }
  0x3c   : > { %s571_s0 = smov (!%p297_p5, %s64_s0), %s569_s21 }
  0x3d   : > { %s66_s19 = scalar_lea.sflag [#allocation3], %s571_s0 }
  0x3e   : > { %430 = dma.done.wait %s66_s19, 16 }
  0x3f   : > { %431 = vsyncadd %s66_s19, 4294967280  ;;  %s515_s22 = sadd.s32 8, %s440_s16  ;;  %s278_s30 = scalar_lea.vmem [#allocation2], %s440_s16 }
  0x40   : > { %p315_p6 = scmp.lt.s32.totalorder %s515_s22, 256  ;;  %p75_p7 = scmp.lt.s32.totalorder %s515_s22, 0 }
  0x41   : > { %s76_s23 = ssub.s32 0, %s515_s22  ;;  %s279_s3 = scalar_lea.vmem %s278_s30, 8 [#allocation2] }
  0x42   : > { %s312_s24 = scalar_select %p315_p6, [#allocation5], [#allocation14] }
  0x43   : > { %s313_s25 = scalar_select %p315_p6, %s515_s22, 0 }
  0x44   : > { %s299_s26 = smin.u32 %s76_s23, %s515_s22  ;;  %s100_s4 = sshll.u32 %s279_s3, 4  ;;  %s101_s4 = int_to_ptr.vmem [resolvable:$true] %s100_s4 }
  0x45   : > { %s88_s27 = sld [smem:[%s312_s24 + %s313_s25]]  ;;  %s78_s28 = sand.u32 7, %s299_s26  }
  0x46   : > { %s79_s29 = ssub.s32 0, %s78_s28 }
  0x47   : > { %s573_s29 = smov (!%p75_p7, %s79_s29), %s78_s28 }
  0x48   : > { %p301_p8 = scmp.lt.s32.totalorder %s573_s29, 0  ;;  %s85_s5 = sadd.s32 8, %s573_s29 }
  0x4a   : > { %s575_s5 = smov (!%p301_p8, %s85_s5), %s573_s29 }
  0x4b   : > { %s302_s6 = sshll.u32 %s88_s27, 4  ;;  %s92_s11 = scalar_lea.sflag [#allocation3], %s575_s5 }
  0x4c   : > { %s90_s10 = scalar_lea.hbm %s562_s1, %s302_s6 }
  0x4d   : > { %s370_s12 = scalar_lea.hbm %s90_s10, 16  ;;  %p375_p12 = scmp.lt.u32.totalorder %s90_s10, %s562_s1 }
  0x4e   : > { %p371_p9 = scmp.ne.s32.totalorder %s90_s10, %s370_s12  ;;  %p376_p13 = scmp.lt.u32.totalorder %s348_s7, %s370_s12 }
  0x4f   : > { %p378_p1 = scmp.lt.u32.totalorder %s370_s12, %s90_s10 }
  0x50   : > { %p372_p10 = pnand %p371_p9, %p315_p6  ;;  %p377_p0 = por %p376_p13, %p375_p12 }
  0x52   : > { %p373_p11 = pneg %p372_p10  ;;  %p379_p2 = por %p378_p1, %p377_p0 }
  0x54   : > { %p380_p3 = pnand %p379_p2, %p373_p11 }
  0x56   : > { %383 = shalt.err (!%p380_p3)  }
  0x57   : > { %s384_s21 = scalar_lea.vmem %s101_s4, 16  ;;  %p391_p8 = scmp.lt.s32.totalorder %s101_s4, %s497_s14 }
  0x58   : > { %p385_p4 = scmp.ne.s32.totalorder %s101_s4, %s384_s21  ;;  %p392_p9 = scmp.lt.s32.totalorder %s362_s15, %s384_s21 }
  0x5a   : > { %p386_p5 = pnand %p385_p4, %p315_p6  ;;  %p393_p10 = por %p392_p9, %p391_p8 }
  0x5c   : > { %p387_p7 = pneg %p386_p5 }
  0x5e   : > { %p394_p12 = pnand %p393_p10, %p387_p7 }
  0x60   : > { %397 = shalt.err (!%p394_p12)  }
  0x61   : > { %314 = dma.hbm_to_vmem [thread:$0]  (%p315_p6), %s90_s10, 16, %s101_s4, %s92_s11 }
  0x62   : > { %s53_s16 = sadd.s32 1, %s440_s16  }
  0x63   : > { %p50_p11 = scmp.ge.s32.totalorder %s53_s16, 256  }
  0x64   :  { %v104_v0 = vld [vmem:[#allocation2] sm:$0xff] (%p50_p11)  ;;  %v105_v1 = vld [vmem:[#allocation2 + $0x8] sm:$0xff] (%p50_p11)  ;;  %v106_v2 = vld [vmem:[#allocation2 + $0x10] sm:$0xff] (%p50_p11)  ;;  %s444_s1 = smov (%p50_p11), [#allocation6]  }
  0x65   :  { %52 = sbr.rel (!%p50_p11) target bundleno = 53 (0x35), region = 71  ;;  %v136_v3 = vmul.f32 (%p50_p11), 11.313708, %v104_v0  ;;  %v137_v4 = vmul.f32 (%p50_p11), 11.313708, %v105_v1  ;;  %v107_v6 = vld [vmem:[#allocation2 + $0x18] sm:$0xff] (%p50_p11) }
  0x66   :  { %v138_v5 = vmul.f32 (%p50_p11), 11.313708, %v106_v2  ;;  %v108_v7 = vld [vmem:[#allocation2 + $0x20] sm:$0xff] (%p50_p11)  ;;  %v109_v8 = vld [vmem:[#allocation2 + $0x28] sm:$0xff] (%p50_p11)  ;;  %v139_v9 = vmul.f32 (%p50_p11), 11.313708, %v107_v6 }
  0x67   :  { %168 = vst [vmem:[#allocation6] sm:$0xff] (%p50_p11), %v136_v3  ;;  %169 = vst [vmem:[#allocation6 + $0x8] sm:$0xff] (%p50_p11), %v137_v4  ;;  %v140_v10 = vmul.f32 (%p50_p11), 11.313708, %v108_v7  ;;  %v141_v11 = vmul.f32 (%p50_p11), 11.313708, %v109_v8 }
  0x68   :  { %170 = vst [vmem:[#allocation6 + $0x10] sm:$0xff] (%p50_p11), %v138_v5  ;;  %v110_v12 = vld [vmem:[#allocation2 + $0x30] sm:$0xff] (%p50_p11)  ;;  %v111_v13 = vld [vmem:[#allocation2 + $0x38] sm:$0xff] (%p50_p11)  ;;  %v112_v14 = vld [vmem:[#allocation2 + $0x40] sm:$0xff] (%p50_p11)  ;;  %s205_s7 = sshll.u32 (%p50_p11), %s444_s1, 4  ;;  %s206_s7 = int_to_ptr.vmem [resolvable:$true] %s205_s7 }
  0x69   :  { %171 = vst [vmem:[#allocation6 + $0x18] sm:$0xff] (%p50_p11), %v139_v9  ;;  %172 = vst [vmem:[#allocation6 + $0x20] sm:$0xff] (%p50_p11), %v140_v10  ;;  %v142_v15 = vmul.f32 (%p50_p11), 11.313708, %v110_v12  ;;  %v143_v16 = vmul.f32 (%p50_p11), 11.313708, %v111_v13  ;;  %p403_p13 = scmp.lt.s32.totalorder (%p50_p11), %s206_s7, %s206_s7 }
  0x6a   :  { %173 = vst [vmem:[#allocation6 + $0x28] sm:$0xff] (%p50_p11), %v141_v11  ;;  %v144_v17 = vmul.f32 (%p50_p11), 11.313708, %v112_v14  ;;  %v113_v18 = vld [vmem:[#allocation2 + $0x48] sm:$0xff] (%p50_p11)  ;;  %v114_v19 = vld [vmem:[#allocation2 + $0x50] sm:$0xff] (%p50_p11)  ;;  %v115_v20 = vld [vmem:[#allocation2 + $0x58] sm:$0xff] (%p50_p11) }
  0x6b   :  { %174 = vst [vmem:[#allocation6 + $0x30] sm:$0xff] (%p50_p11), %v142_v15  ;;  %175 = vst [vmem:[#allocation6 + $0x38] sm:$0xff] (%p50_p11), %v143_v16  ;;  %v145_v21 = vmul.f32 (%p50_p11), 11.313708, %v113_v18  ;;  %v146_v22 = vmul.f32 (%p50_p11), 11.313708, %v114_v19 }
  0x6c   :  { %176 = vst [vmem:[#allocation6 + $0x40] sm:$0xff] %v144_v17  ;;  %v147_v23 = vmul.f32 11.313708, %v115_v20  ;;  %v116_v24 = vld [vmem:[#allocation2 + $0x60] sm:$0xff]  ;;  %v117_v25 = vld [vmem:[#allocation2 + $0x68] sm:$0xff]  ;;  %v118_v26 = vld [vmem:[#allocation2 + $0x70] sm:$0xff] }
  0x6d   :  { %177 = vst [vmem:[#allocation6 + $0x48] sm:$0xff] %v145_v21  ;;  %178 = vst [vmem:[#allocation6 + $0x50] sm:$0xff] %v146_v22  ;;  %v148_v27 = vmul.f32 11.313708, %v116_v24  ;;  %v149_v28 = vmul.f32 11.313708, %v117_v25 }
  0x6e   :  { %179 = vst [vmem:[#allocation6 + $0x58] sm:$0xff] %v147_v23  ;;  %v150_v29 = vmul.f32 11.313708, %v118_v26  ;;  %v119_v30 = vld [vmem:[#allocation2 + $0x78] sm:$0xff]  ;;  %v120_v31 = vld [vmem:[#allocation2 + $0x80] sm:$0xff]  ;;  %v121_v32 = vld [vmem:[#allocation2 + $0x88] sm:$0xff] }
  0x6f   :  { %180 = vst [vmem:[#allocation6 + $0x60] sm:$0xff] %v148_v27  ;;  %181 = vst [vmem:[#allocation6 + $0x68] sm:$0xff] %v149_v28  ;;  %v151_v33 = vmul.f32 11.313708, %v119_v30  ;;  %v152_v34 = vmul.f32 11.313708, %v120_v31 }
  0x70   :  { %182 = vst [vmem:[#allocation6 + $0x70] sm:$0xff] %v150_v29  ;;  %v153_v35 = vmul.f32 11.313708, %v121_v32  ;;  %v122_v36 = vld [vmem:[#allocation2 + $0x90] sm:$0xff]  ;;  %v123_v37 = vld [vmem:[#allocation2 + $0x98] sm:$0xff]  ;;  %v124_v38 = vld [vmem:[#allocation2 + $0xa0] sm:$0xff] }
  0x71   :  { %183 = vst [vmem:[#allocation6 + $0x78] sm:$0xff] %v151_v33  ;;  %184 = vst [vmem:[#allocation6 + $0x80] sm:$0xff] %v152_v34  ;;  %v154_v39 = vmul.f32 11.313708, %v122_v36  ;;  %v155_v40 = vmul.f32 11.313708, %v123_v37 }
  0x72   :  { %185 = vst [vmem:[#allocation6 + $0x88] sm:$0xff] %v153_v35  ;;  %v156_v41 = vmul.f32 11.313708, %v124_v38  ;;  %v125_v42 = vld [vmem:[#allocation2 + $0xa8] sm:$0xff]  ;;  %v126_v43 = vld [vmem:[#allocation2 + $0xb0] sm:$0xff]  ;;  %v127_v44 = vld [vmem:[#allocation2 + $0xb8] sm:$0xff] }
  0x73   :  { %186 = vst [vmem:[#allocation6 + $0x90] sm:$0xff] %v154_v39  ;;  %187 = vst [vmem:[#allocation6 + $0x98] sm:$0xff] %v155_v40  ;;  %v157_v45 = vmul.f32 11.313708, %v125_v42  ;;  %v158_v46 = vmul.f32 11.313708, %v126_v43 }
  0x74   :  { %188 = vst [vmem:[#allocation6 + $0xa0] sm:$0xff] %v156_v41  ;;  %v159_v47 = vmul.f32 11.313708, %v127_v44  ;;  %v128_v48 = vld [vmem:[#allocation2 + $0xc0] sm:$0xff]  ;;  %v129_v49 = vld [vmem:[#allocation2 + $0xc8] sm:$0xff]  ;;  %v130_v50 = vld [vmem:[#allocation2 + $0xd0] sm:$0xff] }
  0x75   :  { %189 = vst [vmem:[#allocation6 + $0xa8] sm:$0xff] %v157_v45  ;;  %190 = vst [vmem:[#allocation6 + $0xb0] sm:$0xff] %v158_v46  ;;  %v160_v51 = vmul.f32 11.313708, %v128_v48  ;;  %v161_v52 = vmul.f32 11.313708, %v129_v49 }
  0x76   :  { %191 = vst [vmem:[#allocation6 + $0xb8] sm:$0xff] %v159_v47  ;;  %v162_v53 = vmul.f32 11.313708, %v130_v50  ;;  %v131_v54 = vld [vmem:[#allocation2 + $0xd8] sm:$0xff]  ;;  %v132_v55 = vld [vmem:[#allocation2 + $0xe0] sm:$0xff]  ;;  %v133_v56 = vld [vmem:[#allocation2 + $0xe8] sm:$0xff] }
  0x77   :  { %192 = vst [vmem:[#allocation6 + $0xc0] sm:$0xff] %v160_v51  ;;  %193 = vst [vmem:[#allocation6 + $0xc8] sm:$0xff] %v161_v52  ;;  %v163_v57 = vmul.f32 11.313708, %v131_v54  ;;  %v164_v58 = vmul.f32 11.313708, %v132_v55 }
  0x78   :  { %194 = vst [vmem:[#allocation6 + $0xd0] sm:$0xff] %v162_v53  ;;  %v165_v59 = vmul.f32 11.313708, %v133_v56  ;;  %v134_v60 = vld [vmem:[#allocation2 + $0xf0] sm:$0xff]  ;;  %v135_v61 = vld [vmem:[#allocation2 + $0xf8] sm:$0xff]  ;;  %s398_s14 = scalar_lea.vmem %s206_s7, 4096 }
  0x79   :  { %195 = vst [vmem:[#allocation6 + $0xd8] sm:$0xff] %v163_v57  ;;  %196 = vst [vmem:[#allocation6 + $0xe0] sm:$0xff] %v164_v58  ;;  %v166_v62 = vmul.f32 11.313708, %v134_v60  ;;  %v167_v63 = vmul.f32 11.313708, %v135_v61  ;;  %p399_p6 = scmp.ne.s32.totalorder %s206_s7, %s398_s14  ;;  %p404_p0 = scmp.lt.s32.totalorder %s398_s14, %s398_s14 }
  0x7a   :  { %197 = vst [vmem:[#allocation6 + $0xe8] sm:$0xff] %v165_v59 }
  0x7b   :  { %198 = vst [vmem:[#allocation6 + $0xf0] sm:$0xff] %v166_v62  ;;  %199 = vst [vmem:[#allocation6 + $0xf8] sm:$0xff] %v167_v63  ;;  %p405_p1 = por %p404_p0, %p403_p13 }
  0x7d   :  { %p406_p2 = pnand %p405_p1, %p399_p6 }
  0x7f   :  { %409 = shalt.err (!%p406_p2)
}
  0x80   :  { %s410_s0 = scalar_lea.hbm %s563_s2, 4096 }
  0x81   :  { %p411_p3 = scmp.ne.s32.totalorder %s563_s2, %s410_s0  ;;  %p414_p4 = scmp.lt.u32.totalorder %s410_s0, %s563_s2 }
  0x83   :  { %p416_p5 = pnand %p414_p4, %p411_p3 }
  0x85   :  { %419 = shalt.err (!%p416_p5)
}
  0x86   :  { %s445_s25 = smov 128   ;;  %s446_s26 = smov 8  }
  0x87   :  { %211 = dma.vmem_to_hbm [thread:$0]  %s206_s7, 4096, %s563_s2, [#allocation7], %s445_s25, %s445_s25, %s446_s26  }
  0x88   :  { %432 = dma.done.wait [#allocation7], 4096  }
  0x89   :  { %433 = vsyncadd [#allocation7], 4294963200 }
  0x8a   :  { %215 = vsyncpa [#allocation7], 1 }
  0x8b   :  { %216 = vsyncmov [#allocation3] }
  0x8e   :  { %s217_s29 = vpop.sfrf %216 }
  0x8f   :  { %p303_p7 = scmp.ne.s32.totalorder %s217_s29, 0 }
  0x91   :  { %221 = shalt.err (%p303_p7)  }
  0x92   :  { %223 = vsyncmov [#allocation3 + $0x1] }
  0x95   :  { %s224_s30 = vpop.sfrf %223 }
  0x96   :  { %p304_p8 = scmp.ne.s32.totalorder %s224_s30, 0 }
  0x98   :  { %228 = shalt.err (%p304_p8)  }
  0x99   :  { %230 = vsyncmov [#allocation3 + $0x2] }
  0x9c   :  { %s231_s3 = vpop.sfrf %230 }
  0x9d   :  { %p305_p9 = scmp.ne.s32.totalorder %s231_s3, 0 }
  0x9f   :  { %235 = shalt.err (%p305_p9)  }
  0xa0   :  { %237 = vsyncmov [#allocation3 + $0x3] }
  0xa3   :  { %s238_s4 = vpop.sfrf %237 }
  0xa4   :  { %p306_p10 = scmp.ne.s32.totalorder %s238_s4, 0 }
  0xa6   :  { %242 = shalt.err (%p306_p10)  }
  0xa7   :  { %244 = vsyncmov [#allocation3 + $0x4] }
  0xaa   :  { %s245_s2 = vpop.sfrf %244 }
  0xab   :  { %p307_p12 = scmp.ne.s32.totalorder %s245_s2, 0 }
  0xad   :  { %249 = shalt.err (%p307_p12)  }
  0xae   :  { %251 = vsyncmov [#allocation3 + $0x5] }
  0xb1   :  { %s252_s5 = vpop.sfrf %251 }
  0xb2   :  { %p308_p11 = scmp.ne.s32.totalorder %s252_s5, 0 }
  0xb4   :  { %256 = shalt.err (%p308_p11)  }
  0xb5   :  { %258 = vsyncmov [#allocation3 + $0x6] }
  0xb8   :  { %s259_s6 = vpop.sfrf %258 }
  0xb9   :  { %p309_p6 = scmp.ne.s32.totalorder %s259_s6, 0 }
  0xbb   :  { %263 = shalt.err (%p309_p6)  }
  0xbc   :  { %265 = vsyncmov [#allocation3 + $0x7] }
  0xbf   :  { %s266_s8 = vpop.sfrf %265 }
  0xc0   :  { %p310_p13 = scmp.ne.s32.totalorder %s266_s8, 0 }
  0xc2   :  { %270 = shalt.err (%p310_p13)  }

</bundles_post_ra>
